<compile_context>
chip_gen: v5e
topology: v5e:2x2
jax: 0.10.0
libtpu: 0.0.40
codegen_flags: <defaults>
</compile_context>

<pallas_src>
import functools

import jax
import jax.numpy as jnp
from jax.experimental import pallas as pl
from jax.experimental.pallas import tpu as pltpu


def _round_up(x, m):
    return ((x + m - 1) // m) * m


def _angle_loss_kernel(scale_ref, cos_ref, phi_t_ref, tgt_ref, loss_ref, *, gamma, n_rows):
    """One batch tile: (TN, C) cos + (TN, 1) gathered phi -> (TN, 1) masked per-row loss."""
    tn, c = cos_ref.shape
    cos = cos_ref[...].astype(jnp.float32)            # (TN, C)
    phi_t = phi_t_ref[...].astype(jnp.float32)        # (TN, 1) phi at target class
    tgt = tgt_ref[...]                                 # (TN, 1) int32
    scale = scale_ref[0, 0]                            # f32 scalar = 1 / (1 + lamb)

    # one-hot mask of the target class per row (index.scatter_(1, target, 1))
    col = jax.lax.broadcasted_iota(jnp.int32, (tn, c), 1)
    mask = col == tgt                                  # (TN, C) bool

    # per-row target logit: cos_t + (phi_t - cos_t) / (1 + lamb)
    cos_t = jnp.sum(jnp.where(mask, cos, 0.0), axis=1, keepdims=True)   # (TN, 1)
    tgt_logit = cos_t + scale * (phi_t - cos_t)                         # (TN, 1)

    # blended logits: only the target column changes
    output = jnp.where(mask, tgt_logit, cos)           # (TN, C)

    # numerically-stable log-softmax, but only the target log-prob is formed
    m = jnp.max(output, axis=1, keepdims=True)
    lse = jnp.log(jnp.sum(jnp.exp(output - m), axis=1, keepdims=True))
    logpt = tgt_logit - m - lse                        # (TN, 1)

    if gamma == 0:
        loss_per = -logpt                              # (1 - pt)**0 == 1
    else:
        pt = jnp.exp(logpt)
        loss_per = -((1.0 - pt) ** gamma) * logpt

    # zero out rows past the true batch size (ragged last block has undefined contents)
    row = jax.lax.broadcasted_iota(jnp.int32, (tn, 1), 0) + pl.program_id(0) * tn
    loss_ref[...] = jnp.where(row < n_rows, loss_per, 0.0)


@functools.partial(jax.jit, static_argnames=("gamma",))
def _angle_loss(cos_theta, phi_theta, target, scale, *, gamma):
    n, c = cos_theta.shape
    target = target.reshape(-1).astype(jnp.int32)

    # Pre-gather phi at the target class (only 1 of C phi entries per row is ever used),
    # so the kernel never streams the (N, C) phi matrix.
    phi_t = jnp.take_along_axis(phi_theta, target[:, None], axis=1)     # (N, 1)
    tgt2 = target.reshape(n, 1)
    scale_arr = jnp.asarray(scale, jnp.float32).reshape(1, 1)

    # --- row tile: only cos is streamed as (TN, C); target ~4 MiB per pipeline buffer ---
    itemsize = jnp.dtype(cos_theta.dtype).itemsize
    rows_budget = max(8, ((4 << 20) // max(c * itemsize, 1)) // 8 * 8)  # floor to x8
    tn = min(rows_budget, _round_up(n, 8))
    if n >= 16:
        # guarantee >= 2 grid tiles so both v7x TensorCores get work
        tn = min(tn, _round_up(pl.cdiv(n, 2), 8))
    tn = max(8, tn)

    num_tiles = pl.cdiv(n, tn)
    n_out = num_tiles * tn          # only the tiny (N_out, 1) OUTPUT is padded, never inputs

    # explicit VMEM budget: cos double-buffer + small per-row buffers + output + margin
    cos_buf = tn * c * itemsize
    small_buf = tn * (jnp.dtype(phi_theta.dtype).itemsize + 4 + 4)
    vmem_limit = int(min(48 << 20, max(16 << 20, 2 * (2 * cos_buf + 2 * small_buf) + (4 << 20))))

    kernel = functools.partial(_angle_loss_kernel, gamma=gamma, n_rows=n)

    per_row = pl.pallas_call(
        kernel,
        out_shape=jax.ShapeDtypeStruct((n_out, 1), jnp.float32),
        grid_spec=pltpu.PrefetchScalarGridSpec(
            num_scalar_prefetch=0,
            grid=(num_tiles,),
            in_specs=[
                pl.BlockSpec((1, 1), lambda i: (0, 0), memory_space=pltpu.SMEM),
                pl.BlockSpec((tn, c), lambda i: (i, 0)),
                pl.BlockSpec((tn, 1), lambda i: (i, 0)),
                pl.BlockSpec((tn, 1), lambda i: (i, 0)),
            ],
            out_specs=pl.BlockSpec((tn, 1), lambda i: (i, 0)),
        ),
        compiler_params=pltpu.CompilerParams(
            dimension_semantics=("parallel",),
            vmem_limit_bytes=vmem_limit,
        ),
    )(scale_arr, cos_theta, phi_t, tgt2)

    # rows >= n were zeroed in-kernel; divide by the TRUE batch size
    return jnp.sum(per_row) / jnp.float32(n)


class AngleLoss:
    """Stateful wrapper mirroring the PyTorch module (gamma, it, lamb schedule)."""

    def __init__(self, gamma=0):
        self.gamma = gamma
        self.it = 0
        self.LambdaMin = 5.0
        self.LambdaMax = 1500.0
        self.lamb = 1500.0

    def __call__(self, inputs, target):
        cos_theta, phi_theta = inputs
        self.it += 1
        self.lamb = max(self.LambdaMin, self.LambdaMax / (1 + 0.1 * self.it))
        scale = jnp.float32(1.0 / (1.0 + self.lamb))   # runtime scalar -> no recompile
        target = jnp.asarray(target).reshape(-1).astype(jnp.int32)
        # NOTE: out-of-range / ignore-index targets (e.g. -1) are not supported (same as
        # PyTorch gather would error); they would silently produce a 0 contribution here.
        return _angle_loss(cos_theta, phi_theta, target, scale, gamma=self.gamma)


def _reference(cos_theta, phi_theta, target, lamb, gamma):
    n, c = cos_theta.shape
    mask = jax.nn.one_hot(target, c, dtype=jnp.float32).astype(bool)
    scale = 1.0 / (1.0 + lamb)
    output = jnp.where(mask, cos_theta - cos_theta * scale + phi_theta * scale, cos_theta)
    logsm = jax.nn.log_softmax(output, axis=1)
    logpt = logsm[jnp.arange(n), target]
    pt = jnp.exp(logpt)
    return jnp.mean(-1.0 * (1.0 - pt) ** gamma * logpt)


if __name__ == "__main__":
    key = jax.random.PRNGKey(0)
    k1, k2, k3 = jax.random.split(key, 3)

    N, C = 8, 16  # batch, number of classes
    cos_theta = jax.random.uniform(k1, (N, C), jnp.float32, -1.0, 1.0)
    # phi_theta mimics the monotone angular margin transform (synthetic data)
    phi_theta = jax.random.uniform(k2, (N, C), jnp.float32, -2.0, 1.0)
    target = jax.random.randint(k3, (N,), 0, C, dtype=jnp.int32)

    crit = AngleLoss(gamma=0)
    loss = jax.block_until_ready(crit((cos_theta, phi_theta), target))   # it=1
    lamb1 = max(5.0, 1500.0 / (1 + 0.1 * 1))
    ref = _reference(cos_theta, phi_theta, target, lamb1, gamma=0)
    assert jnp.allclose(loss, ref, rtol=1e-5, atol=1e-5), (loss, ref)

    # second call with a different lamb reuses the same compiled kernel (lamb is traced)
    loss2 = jax.block_until_ready(crit((cos_theta, phi_theta), target))  # it=2
    lamb2 = max(5.0, 1500.0 / (1 + 0.1 * 2))
    ref2 = _reference(cos_theta, phi_theta, target, lamb2, gamma=0)
    assert jnp.allclose(loss2, ref2, rtol=1e-5, atol=1e-5), (loss2, ref2)

    # multi-tile + ragged-last-block path (N not a multiple of TN), nonzero gamma
    N2, C2 = 20, 32
    kk1, kk2, kk3 = jax.random.split(jax.random.PRNGKey(1), 3)
    cos2 = jax.random.uniform(kk1, (N2, C2), jnp.float32, -1.0, 1.0)
    phi2 = jax.random.uniform(kk2, (N2, C2), jnp.float32, -2.0, 1.0)
    tgt_b = jax.random.randint(kk3, (N2,), 0, C2, dtype=jnp.int32)
    crit2 = AngleLoss(gamma=2)
    loss3 = jax.block_until_ready(crit2((cos2, phi2), tgt_b))            # it=1
    lamb3 = max(5.0, 1500.0 / (1 + 0.1 * 1))
    ref3 = _reference(cos2, phi2, tgt_b, lamb3, gamma=2)
    assert jnp.allclose(loss3, ref3, rtol=1e-4, atol=1e-5), (loss3, ref3)

    print("KERNEL_OK")
</pallas_src>

<mosaic_0001>
module attributes {stable_mosaic.version = 11 : i64} {
  func.func @_angle_loss_kernel(%arg0: i32, %arg1: memref<1x1xf32, #tpu.memory_space<smem>>, %arg2: memref<8x16xf32, #tpu.memory_space<vmem>>, %arg3: memref<8x1xf32, #tpu.memory_space<vmem>>, %arg4: memref<8x1xi32, #tpu.memory_space<vmem>>, %arg5: memref<8x1xf32, #tpu.memory_space<vmem>>) attributes {dimension_semantics = [#tpu.dimension_semantics<parallel>], iteration_bounds = array<i64: 1>, scalar_prefetch = 0 : i64, scratch_operands = 0 : i64, tpu.core_type = #tpu.core_type<tc>, window_params = [{transform_indices = @transform_0, window_bounds = array<i64: 1, 1>}, {transform_indices = @transform_1, window_bounds = array<i64: 8, 16>}, {transform_indices = @transform_2, window_bounds = array<i64: 8, 1>}, {transform_indices = @transform_3, window_bounds = array<i64: 8, 1>}, {transform_indices = @transform_4, window_bounds = array<i64: 8, 1>}]} {
    %c0 = arith.constant 0 : index
    %c0_0 = arith.constant 0 : index
    %0 = vector.load %arg2[%c0, %c0_0] : memref<8x16xf32, #tpu.memory_space<vmem>>, vector<8x16xf32>
    %c0_1 = arith.constant 0 : index
    %c0_2 = arith.constant 0 : index
    %1 = vector.load %arg3[%c0_1, %c0_2] : memref<8x1xf32, #tpu.memory_space<vmem>>, vector<8x1xf32>
    %c0_3 = arith.constant 0 : index
    %c0_4 = arith.constant 0 : index
    %2 = vector.load %arg4[%c0_3, %c0_4] : memref<8x1xi32, #tpu.memory_space<vmem>>, vector<8x1xi32>
    %c0_5 = arith.constant 0 : index
    %c0_6 = arith.constant 0 : index
    %3 = memref.load %arg1[%c0_5, %c0_6] : memref<1x1xf32, #tpu.memory_space<smem>>
    %4 = tpu.iota {dimensions = array<i32: 1>} : vector<8x16xi32>
    %5 = vector.broadcast %2 : vector<8x1xi32> to vector<8x16xi32>
    %6 = arith.cmpi eq, %4, %5 : vector<8x16xi32>
    %cst = arith.constant 0.000000e+00 : f32
    %7 = vector.broadcast %cst : f32 to vector<8x16xf32>
    %8 = arith.select %6, %0, %7 : vector<8x16xi1>, vector<8x16xf32>
    %cst_7 = arith.constant dense<0.000000e+00> : vector<8xf32>
    %9 = vector.multi_reduction <add>, %8, %cst_7 [1] : vector<8x16xf32> to vector<8xf32>
    %10 = vector.shape_cast %9 : vector<8xf32> to vector<8x1xf32>
    %11 = arith.subf %1, %10 : vector<8x1xf32>
    %12 = vector.broadcast %3 : f32 to vector<8x1xf32>
    %13 = arith.mulf %12, %11 : vector<8x1xf32>
    %14 = arith.addf %10, %13 : vector<8x1xf32>
    %15 = vector.shape_cast %14 : vector<8x1xf32> to vector<8x1xf32>
    %16 = vector.broadcast %15 : vector<8x1xf32> to vector<8x16xf32>
    %17 = arith.select %6, %16, %0 : vector<8x16xi1>, vector<8x16xf32>
    %cst_8 = arith.constant dense<0xFF800000> : vector<8xf32>
    %18 = vector.multi_reduction <maximumf>, %17, %cst_8 [1] : vector<8x16xf32> to vector<8xf32>
    %19 = vector.shape_cast %18 : vector<8xf32> to vector<8x1xf32>
    %20 = vector.broadcast %19 : vector<8x1xf32> to vector<8x16xf32>
    %21 = arith.subf %17, %20 : vector<8x16xf32>
    %22 = math.exp %21 : vector<8x16xf32>
    %cst_9 = arith.constant dense<0.000000e+00> : vector<8xf32>
    %23 = vector.multi_reduction <add>, %22, %cst_9 [1] : vector<8x16xf32> to vector<8xf32>
    %24 = vector.shape_cast %23 : vector<8xf32> to vector<8x1xf32>
    %25 = math.log %24 : vector<8x1xf32>
    %26 = arith.subf %14, %19 : vector<8x1xf32>
    %27 = arith.subf %26, %25 : vector<8x1xf32>
    %cst_10 = arith.constant 0.000000e+00 : f32
    %28 = vector.broadcast %cst_10 : f32 to vector<8x1xf32>
    %29 = arith.subf %28, %27 : vector<8x1xf32>
    %30 = tpu.iota {dimensions = array<i32: 0>} : vector<8x1xi32>
    %c8_i32 = arith.constant 8 : i32
    %31 = arith.muli %arg0, %c8_i32 : i32
    %32 = vector.broadcast %31 : i32 to vector<8x1xi32>
    %33 = arith.addi %30, %32 : vector<8x1xi32>
    %c8_i32_11 = arith.constant 8 : i32
    %34 = vector.broadcast %c8_i32_11 : i32 to vector<8x1xi32>
    %35 = arith.cmpi slt, %33, %34 : vector<8x1xi32>
    %cst_12 = arith.constant 0.000000e+00 : f32
    %36 = vector.broadcast %cst_12 : f32 to vector<8x1xf32>
    %37 = arith.select %35, %29, %36 : vector<8x1xi1>, vector<8x1xf32>
    %c0_13 = arith.constant 0 : index
    %c0_14 = arith.constant 0 : index
    %38 = vector.load %arg5[%c0_13, %c0_14] : memref<8x1xf32, #tpu.memory_space<vmem>>, vector<8x1xf32>
    tpu.vector_store %arg5[%c0_13, %c0_14], %37 {strides = array<i32>} : memref<8x1xf32, #tpu.memory_space<vmem>>, vector<8x1xf32>,
    return
  }
  func.func @transform_0(%arg0: i32) -> (i32, i32) {
    %c0_i32 = arith.constant 0 : i32
    %c0_i32_0 = arith.constant 0 : i32
    %c0_i32_1 = arith.constant 0 : i32
    return %c0_i32, %c0_i32_0 : i32, i32
  }
  func.func @transform_1(%arg0: i32) -> (i32, i32) {
    %c0_i32 = arith.constant 0 : i32
    %c0_i32_0 = arith.constant 0 : i32
    return %arg0, %c0_i32 : i32, i32
  }
  func.func @transform_2(%arg0: i32) -> (i32, i32) {
    %c0_i32 = arith.constant 0 : i32
    %c0_i32_0 = arith.constant 0 : i32
    return %arg0, %c0_i32 : i32, i32
  }
  func.func @transform_3(%arg0: i32) -> (i32, i32) {
    %c0_i32 = arith.constant 0 : i32
    %c0_i32_0 = arith.constant 0 : i32
    return %arg0, %c0_i32 : i32, i32
  }
  func.func @transform_4(%arg0: i32) -> (i32, i32) {
    %c0_i32 = arith.constant 0 : i32
    %c0_i32_0 = arith.constant 0 : i32
    return %arg0, %c0_i32 : i32, i32
  }
}

</mosaic_0001>

<bundles_post_ra>
// kernel: _angle_loss.1
= control target key start
LH: loop header
LB: loop body
LE: loop exit
PB: predicated region body
PF: predicated region fallthrough
CT: control target
= control target key end

     0   :  { %v77_v0 = vmov 0   ;;  %v22_v2 = vlaneseq  ;;  %vm29_vm0 = vcmask 130048   ;;  %vm64_vm2 = vcmask 7168   ;;  %s121_s3 = inlined_call_operand.vmem [shape: s32[8,1], index: 3, kind: input, shape index: {}]   ;;  %s122_s1 = inlined_call_operand.vmem [shape: f32[8,16], index: 1, kind: input, shape index: {}]   ;;  %s123_s2 = inlined_call_operand.vmem [shape: f32[8,1], index: 2, kind: input, shape index: {}]   ;;  %s124_s0 = inlined_call_operand.<no memory space> [shape: f32[1,1], index: 0, kind: input, shape index: {}]   ;;  %s125_s4 = inlined_call_operand.vmem [shape: f32[8,1], index: 4, kind: output, shape index: {}]  }
   0x1   :  { %71 = vset.pattern.permute.xlu0 %v77_v0  ;;  %v20_v1 = vld [vmem:[%s121_s3] sm:$0xff]  ;;  %72 = vset.pattern.permute.xlu1 %v77_v0  ;;  %v34_v10 = vstv %s124_s0 }
   0x2   :  { %25 = vperm.xlu0 %71, %v20_v1   ;;  %v23_v3 = vand.u32 127, %v22_v2  ;;  %v18_v4 = vld [vmem:[%s122_s1] sm:$0xff] }
   0x3   :  { %v19_v8 = vld [vmem:[%s123_s2] sm:$0xff] }
  0x74   :  { %v26_v5 = vpop.permute.xlu0 %25 }
  0x75   :  { %vm27_vm1 = vcmp.eq.s32.totalorder %v23_v3, %v26_v5 }
  0x76   :  { %v28_v6 = vsel %vm27_vm1, %v18_v4, 0.0 }
  0x77   :  { %v30_v7 = vsel %vm29_vm0, %v28_v6, 0.0 }
  0x78   :  { %31 = vadd.xlane.f32.xlu0 %v30_v7 }
  0xeb   :  { %v32_v9 = vpop.xlane.xlu0 %31 }
  0xec   :  { %v33_v11 = vsub.f32 %v19_v8, %v32_v9 }
  0xee   :  { %v35_v12 = vmul.f32 %v34_v10, %v33_v11 }
  0xf0   :  { %v36_v13 = vadd.f32 %v35_v12, %v32_v9 }
  0xf2   :  { %39 = vperm.xlu1 %72, %v36_v13  }
 0x164   :  { %v40_v14 = vpop.permute.xlu1 %39 }
 0x165   :  { %v42_v15 = vsel %vm27_vm1, %v40_v14, %v18_v4 }
 0x166   :  { %v43_v16 = vsel %vm29_vm0, %v42_v15, -inf }
 0x167   :  { %44 = vmax.xlane.f32.xlu1 %v43_v16 }
 0x1da   :  { %v45_v17 = vpop.xlane.xlu1 %44 }
 0x1db   :  { %v46_v18 = vsub.f32 %v42_v15, %v45_v17  ;;  %v54_v24 = vsub.f32 %v36_v13, %v45_v17 }
 0x1dd   :  { %v47_v19 = vmul.f32 1.442695, %v46_v18 }
 0x1df   :  { %73 = vpow2.f32 %v47_v19 }
 0x1e5   :  { %v74_v20 = vpop.eup %73 }
 0x1e6   :  { %v49_v21 = vsel %vm29_vm0, %v74_v20, 0.0 }
 0x1e7   :  { %50 = vadd.xlane.f32.xlu2 %v49_v21 }
 0x25a   :  { %v51_v22 = vpop.xlane.xlu2 %50 }
 0x25b   :  { %75 = vlog2.f32 %v51_v22 }
 0x261   :  { %v76_v23 = vpop.eup %75 }
 0x262   :  { %v53_v25 = vmul.f32 0.6931472, %v76_v23 }
 0x264   :  { %v55_v26 = vsub.f32 %v54_v24, %v53_v25 }
 0x266   :  { %v56_v27 = vsub.f32 0.0, %v55_v26 }
 0x268   :  { %65 = vst.msk [vmem:[%s125_s4] sm:$0xff] %vm64_vm2, %v56_v27 }

</bundles_post_ra>
